<compile_context>
chip_gen: v5e
topology: v5e:2x2
jax: 0.10.0
libtpu: 0.0.40
codegen_flags: <defaults>
</compile_context>

<pallas_src>
import math
from functools import partial

import jax
import jax.numpy as jnp
import numpy as np
from jax.experimental import pallas as pl
from jax.experimental.pallas import tpu as pltpu


# Rows (parent nodes) per grid step. Multiple of 16 so the sublane dim is aligned for
# both f32 and bf16 tiles; large enough to be near the HBM roofline when M is big.
_TILE_ROWS = 256

# Per-tile VMEM budget (bytes) for materializing the fused (tm, out_f + in_f*degree)
# root+branch product. Above this, compute branch children one at a time (v7x: 64 MiB
# physical VMEM / 32 MiB scoped default).
_WIDE_PRODUCT_BUDGET = 4 * 1024 * 1024


def _leaky(v):
    return jnp.where(v > 0, v, 0.2 * v)


# ---------------------------------------------------------------------------
# Fused per-layer kernel
# ---------------------------------------------------------------------------
def _fused_layer_kernel(x_ref, w_rb_ref, w_l1_ref, w_l2_ref, bias_ref, out_ref,
                        *, degree, upsample, activation, in_f, out_f,
                        materialize_wide):
    """One complete TreeGCN layer for a tile of `tm` parent nodes.

    Output tile layout: (tm, degree*out_f) — child d of each parent row occupies
    columns [d*out_f, (d+1)*out_f). A free row-major reshape in the wrapper turns
    this into (B, N*degree, out_f) parent-major child ordering.
    """
    x = x_ref[...]                      # (tm, in_f), compute dtype (f32 or bf16)
    w_l1 = w_l1_ref[...]                # (in_f, in_f*support)
    w_l2 = w_l2_ref[...]                # (in_f*support, out_f)
    bias = bias_ref[...]                # (1, out_f), f32
    cdt = x.dtype

    if not upsample:
        # degree == 1: loop path runs on x itself.
        root = jnp.dot(x, w_rb_ref[...], preferred_element_type=jnp.float32)
        h = _leaky(jnp.dot(x, w_l1, preferred_element_type=jnp.float32))
        loop = jnp.dot(h.astype(cdt), w_l2, preferred_element_type=jnp.float32)
        out = root + loop + bias
        if activation:
            out = _leaky(out)
        out_ref[...] = out.astype(out_ref.dtype)
        return

    if materialize_wide:
        # Single wide MXU matmul: root and all branch children share LHS and K.
        y = jnp.dot(x, w_rb_ref[...], preferred_element_type=jnp.float32)
        root = y[:, :out_f]

        def child(d):
            return y[:, out_f + d * in_f: out_f + (d + 1) * in_f].astype(cdt)
    else:
        # VMEM-lean path (v7x): never materialize the (tm, in_f*degree) branch buffer;
        # multiply by a per-child weight slice instead.
        root = jnp.dot(x, w_rb_ref[:, :out_f], preferred_element_type=jnp.float32)

        def child(d):
            w_d = w_rb_ref[:, out_f + d * in_f: out_f + (d + 1) * in_f]
            return jnp.dot(x, w_d, preferred_element_type=jnp.float32).astype(cdt)

    # Hoist the (1, out_f) bias broadcast out of the per-child loop (no CSE in JAX).
    root_b = root + bias

    outs = []
    for d in range(degree):             # static, unrolled over children
        h = _leaky(jnp.dot(child(d), w_l1, preferred_element_type=jnp.float32))
        loop = jnp.dot(h.astype(cdt), w_l2, preferred_element_type=jnp.float32)
        o = root_b + loop
        if activation:
            o = _leaky(o)
        outs.append(o.astype(out_ref.dtype))
    # One lane-dense (tm, degree*out_f) store per tile instead of `degree` narrow ones.
    out_ref[...] = jnp.concatenate(outs, axis=-1)


# ---------------------------------------------------------------------------
# Layer / generator wrappers
# ---------------------------------------------------------------------------
def tree_gcn_layer(x, p, *, degree, activation, tile_rows=_TILE_ROWS):
    B, N, in_f = x.shape
    out_f = p["bias"].shape[1]
    upsample = degree > 1
    cdt = p["W_rb"].dtype               # compute/storage dtype (f32 or bf16)

    M = B * N
    x2d = x.reshape(M, in_f).astype(cdt)            # free row-major reshape
    out_w = degree * out_f if upsample else out_f

    tm = M if M <= tile_rows else tile_rows
    grid = (pl.cdiv(M, tm),)

    materialize_wide = (
        not upsample
        or tm * (out_f + in_f * degree) * 4 <= _WIDE_PRODUCT_BUDGET
    )

    kernel = partial(
        _fused_layer_kernel,
        degree=degree, upsample=upsample, activation=activation,
        in_f=in_f, out_f=out_f, materialize_wide=materialize_wide,
    )

    w_rb, w_l1, w_l2, bias = p["W_rb"], p["W_loop1"], p["W_loop2"], p["bias"]

    out2d = pl.pallas_call(
        kernel,
        out_shape=jax.ShapeDtypeStruct((M, out_w), cdt),
        grid=grid,
        in_specs=[
            pl.BlockSpec((tm, in_f), lambda i: (i, 0)),        # activations: row-tiled
            pl.BlockSpec(w_rb.shape, lambda i: (0, 0)),        # weights stay resident
            pl.BlockSpec(w_l1.shape, lambda i: (0, 0)),
            pl.BlockSpec(w_l2.shape, lambda i: (0, 0)),
            pl.BlockSpec(bias.shape, lambda i: (0, 0)),
        ],
        out_specs=pl.BlockSpec((tm, out_w), lambda i: (i, 0)),
        compiler_params=pltpu.CompilerParams(
            dimension_semantics=("parallel",),   # v7x: shard row tiles over both TCs
            vmem_limit_bytes=32 * 1024 * 1024,   # explicit scoped-VMEM limit (v5e default is 16 MiB)
        ),
    )(x2d, w_rb, w_l1, w_l2, bias)

    new_N = N * degree if upsample else N
    # Free row-major reshape: (B*N, degree*out_f) -> (B, N*degree, out_f),
    # already in parent-major child order — no jnp.repeat, no interleaving copy.
    return out2d.reshape(B, new_N, out_f)


def tree_gcn_generator(z, prepared_params, degrees):
    x = z
    n_layers = len(prepared_params)
    for i, p in enumerate(prepared_params):
        x = tree_gcn_layer(x, p, degree=degrees[i], activation=(i != n_layers - 1))
    return x.astype(jnp.float32)


def prepare_params(raw_params, degrees, dtype=jnp.float32):
    """Concatenate W_root|W_branch once (offline) and cast to the compute dtype."""
    prepared = []
    for p, deg in zip(raw_params, degrees):
        w_rb = p["W_root"]
        if deg > 1:
            # x @ [W_root | W_branch] is column-wise identical to the separate matmuls.
            w_rb = jnp.concatenate([p["W_root"], p["W_branch"]], axis=1)
        prepared.append({
            "W_rb": w_rb.astype(dtype),
            "W_loop1": p["W_loop1"].astype(dtype),
            "W_loop2": p["W_loop2"].astype(dtype),
            "bias": p["bias"].astype(jnp.float32),   # bias / activation math stays f32
        })
    return prepared


# ---------------------------------------------------------------------------
# Deterministic parameter init (shapes follow TreeGCNLayer.__init__)
# ---------------------------------------------------------------------------
def init_params(key, features, degrees, support):
    params = []
    for i in range(len(features) - 1):
        in_f, out_f, deg = features[i], features[i + 1], degrees[i]
        key, k1, k2, k3, k4, k5 = jax.random.split(key, 6)
        s_in = 1.0 / math.sqrt(in_f)
        s_hid = 1.0 / math.sqrt(in_f * support)
        s_out = 1.0 / math.sqrt(out_f)
        p = {
            "W_root": jax.random.uniform(k1, (in_f, out_f), jnp.float32, -s_in, s_in),
            "W_loop1": jax.random.uniform(k3, (in_f, in_f * support), jnp.float32, -s_in, s_in),
            "W_loop2": jax.random.uniform(k4, (in_f * support, out_f), jnp.float32, -s_hid, s_hid),
            "bias": jax.random.uniform(k5, (1, out_f), jnp.float32, -s_out, s_out),
        }
        if deg > 1:  # upsample = degree > 1
            p["W_branch"] = jax.random.uniform(k2, (in_f, in_f * deg), jnp.float32, -s_in, s_in)
        params.append(p)
    return params


# ---------------------------------------------------------------------------
# Pure-JAX reference (mirrors the PyTorch forward exactly)
# ---------------------------------------------------------------------------
def ref_generator(z, params, degrees):
    x = z
    n_layers = len(params)
    for i, p in enumerate(params):
        B, N, in_f = x.shape
        deg = degrees[i]
        root = x @ p["W_root"]
        if deg > 1:
            branch = (x @ p["W_branch"]).reshape(B, N * deg, in_f)
            branch = _leaky(branch @ p["W_loop1"]) @ p["W_loop2"]
            root = jnp.repeat(root, deg, axis=1)
            combined = root + branch
        else:
            loop = _leaky(x @ p["W_loop1"]) @ p["W_loop2"]
            combined = root + loop
        out = combined + p["bias"]
        if i != n_layers - 1:
            out = _leaky(out)
        x = out
    return x


# ---------------------------------------------------------------------------
if __name__ == "__main__":
    # Small config consistent with TreeGCNGenerator(features, degrees, support)
    features = [32, 32, 32, 32, 16]   # 4 layers
    degrees = [1, 2, 2, 4]            # nodes: 1 -> 1 -> 2 -> 4 -> 16
    support = 4
    B = 2

    key = jax.random.PRNGKey(0)
    kz, kp = jax.random.split(key)
    z = jax.random.normal(kz, (B, 1, features[0]), dtype=jnp.float32)
    params = init_params(kp, features, degrees, support)
    expected = jax.block_until_ready(ref_generator(z, params, degrees))

    fwd = jax.jit(partial(tree_gcn_generator, degrees=tuple(degrees)))

    # f32 path: must match the reference tightly.
    prep32 = prepare_params(params, degrees, jnp.float32)
    out = jax.block_until_ready(fwd(z, prep32))
    assert out.shape == (B, int(np.prod(degrees)), features[-1]), out.shape
    np.testing.assert_allclose(np.asarray(out), np.asarray(expected), rtol=1e-4, atol=1e-5)

    # bf16 weights/activations (halves HBM bytes, bf16 MXU on v6e/v7x), f32 accumulation.
    prep16 = prepare_params(params, degrees, jnp.bfloat16)
    out16 = jax.block_until_ready(fwd(z, prep16))
    assert out16.shape == out.shape
    assert np.all(np.isfinite(np.asarray(out16)))
    np.testing.assert_allclose(np.asarray(out16), np.asarray(expected), rtol=1e-1, atol=1e-1)

    print("KERNEL_OK")
</pallas_src>

<mosaic_0001>
module attributes {stable_mosaic.version = 11 : i64} {
  func.func @_fused_layer_kernel(%arg0: i32, %arg1: memref<2x32xf32, #tpu.memory_space<vmem>>, %arg2: memref<32x32xf32, #tpu.memory_space<vmem>>, %arg3: memref<32x128xf32, #tpu.memory_space<vmem>>, %arg4: memref<128x32xf32, #tpu.memory_space<vmem>>, %arg5: memref<1x32xf32, #tpu.memory_space<vmem>>, %arg6: memref<2x32xf32, #tpu.memory_space<vmem>>) attributes {dimension_semantics = [#tpu.dimension_semantics<parallel>], iteration_bounds = array<i64: 1>, scalar_prefetch = 0 : i64, scratch_operands = 0 : i64, tpu.core_type = #tpu.core_type<tc>, window_params = [{transform_indices = @transform_0, window_bounds = array<i64: 2, 32>}, {pipeline_mode = #tpu.pipeline_mode<synchronous>, transform_indices = @transform_1, window_bounds = array<i64: 32, 32>}, {pipeline_mode = #tpu.pipeline_mode<synchronous>, transform_indices = @transform_2, window_bounds = array<i64: 32, 128>}, {pipeline_mode = #tpu.pipeline_mode<synchronous>, transform_indices = @transform_3, window_bounds = array<i64: 128, 32>}, {pipeline_mode = #tpu.pipeline_mode<synchronous>, transform_indices = @transform_4, window_bounds = array<i64: 1, 32>}, {transform_indices = @transform_5, window_bounds = array<i64: 2, 32>}]} {
    %c0 = arith.constant 0 : index
    %c0_0 = arith.constant 0 : index
    %0 = vector.load %arg1[%c0, %c0_0] : memref<2x32xf32, #tpu.memory_space<vmem>>, vector<2x32xf32>
    %c0_1 = arith.constant 0 : index
    %c0_2 = arith.constant 0 : index
    %1 = vector.load %arg3[%c0_1, %c0_2] : memref<32x128xf32, #tpu.memory_space<vmem>>, vector<32x128xf32>
    %c0_3 = arith.constant 0 : index
    %c0_4 = arith.constant 0 : index
    %2 = vector.load %arg4[%c0_3, %c0_4] : memref<128x32xf32, #tpu.memory_space<vmem>>, vector<128x32xf32>
    %c0_5 = arith.constant 0 : index
    %c0_6 = arith.constant 0 : index
    %3 = vector.load %arg5[%c0_5, %c0_6] : memref<1x32xf32, #tpu.memory_space<vmem>>, vector<1x32xf32>
    %c0_7 = arith.constant 0 : index
    %c0_8 = arith.constant 0 : index
    %4 = vector.load %arg2[%c0_7, %c0_8] : memref<32x32xf32, #tpu.memory_space<vmem>>, vector<32x32xf32>
    %cst = arith.constant dense<0.000000e+00> : vector<2x32xf32>
    %5 = tpu.matmul %0, %4, %cst {dimension_numbers = #tpu.dot_dimension_numbers<[1], [0], [0], [1], [0, 0, 1, 1], [], []>} : vector<2x32xf32>, vector<32x32xf32>, vector<2x32xf32> -> vector<2x32xf32>
    %cst_9 = arith.constant dense<0.000000e+00> : vector<2x128xf32>
    %6 = tpu.matmul %0, %1, %cst_9 {dimension_numbers = #tpu.dot_dimension_numbers<[1], [0], [0], [1], [0, 0, 1, 1], [], []>} : vector<2x32xf32>, vector<32x128xf32>, vector<2x128xf32> -> vector<2x128xf32>
    %cst_10 = arith.constant 0.000000e+00 : f32
    %7 = vector.broadcast %cst_10 : f32 to vector<2x128xf32>
    %8 = arith.cmpf ogt, %6, %7 : vector<2x128xf32>
    %cst_11 = arith.constant 2.000000e-01 : f32
    %9 = vector.broadcast %cst_11 : f32 to vector<2x128xf32>
    %10 = arith.mulf %9, %6 : vector<2x128xf32>
    %11 = arith.select %8, %6, %10 : vector<2x128xi1>, vector<2x128xf32>
    %cst_12 = arith.constant dense<0.000000e+00> : vector<2x32xf32>
    %12 = tpu.matmul %11, %2, %cst_12 {dimension_numbers = #tpu.dot_dimension_numbers<[1], [0], [0], [1], [0, 0, 1, 1], [], []>} : vector<2x128xf32>, vector<128x32xf32>, vector<2x32xf32> -> vector<2x32xf32>
    %13 = arith.addf %5, %12 : vector<2x32xf32>
    %14 = vector.broadcast %3 : vector<1x32xf32> to vector<2x32xf32>
    %15 = arith.addf %13, %14 : vector<2x32xf32>
    %cst_13 = arith.constant 0.000000e+00 : f32
    %16 = vector.broadcast %cst_13 : f32 to vector<2x32xf32>
    %17 = arith.cmpf ogt, %15, %16 : vector<2x32xf32>
    %cst_14 = arith.constant 2.000000e-01 : f32
    %18 = vector.broadcast %cst_14 : f32 to vector<2x32xf32>
    %19 = arith.mulf %18, %15 : vector<2x32xf32>
    %20 = arith.select %17, %15, %19 : vector<2x32xi1>, vector<2x32xf32>
    %c0_15 = arith.constant 0 : index
    %c0_16 = arith.constant 0 : index
    %21 = vector.load %arg6[%c0_15, %c0_16] : memref<2x32xf32, #tpu.memory_space<vmem>>, vector<2x32xf32>
    tpu.vector_store %arg6[%c0_15, %c0_16], %20 {strides = array<i32>} : memref<2x32xf32, #tpu.memory_space<vmem>>, vector<2x32xf32>,
    return
  }
  func.func @transform_0(%arg0: i32) -> (i32, i32) {
    %c0_i32 = arith.constant 0 : i32
    %c0_i32_0 = arith.constant 0 : i32
    return %arg0, %c0_i32 : i32, i32
  }
  func.func @transform_1(%arg0: i32) -> (i32, i32) {
    %c0_i32 = arith.constant 0 : i32
    %c0_i32_0 = arith.constant 0 : i32
    %c0_i32_1 = arith.constant 0 : i32
    return %c0_i32, %c0_i32_0 : i32, i32
  }
  func.func @transform_2(%arg0: i32) -> (i32, i32) {
    %c0_i32 = arith.constant 0 : i32
    %c0_i32_0 = arith.constant 0 : i32
    %c0_i32_1 = arith.constant 0 : i32
    return %c0_i32, %c0_i32_0 : i32, i32
  }
  func.func @transform_3(%arg0: i32) -> (i32, i32) {
    %c0_i32 = arith.constant 0 : i32
    %c0_i32_0 = arith.constant 0 : i32
    %c0_i32_1 = arith.constant 0 : i32
    return %c0_i32, %c0_i32_0 : i32, i32
  }
  func.func @transform_4(%arg0: i32) -> (i32, i32) {
    %c0_i32 = arith.constant 0 : i32
    %c0_i32_0 = arith.constant 0 : i32
    %c0_i32_1 = arith.constant 0 : i32
    return %c0_i32, %c0_i32_0 : i32, i32
  }
  func.func @transform_5(%arg0: i32) -> (i32, i32) {
    %c0_i32 = arith.constant 0 : i32
    %c0_i32_0 = arith.constant 0 : i32
    return %arg0, %c0_i32 : i32, i32
  }
}

module attributes {stable_mosaic.version = 11 : i64} {
  func.func @_fused_layer_kernel(%arg0: i32, %arg1: memref<2x32xf32, #tpu.memory_space<vmem>>, %arg2: memref<32x96xf32, #tpu.memory_space<vmem>>, %arg3: memref<32x128xf32, #tpu.memory_space<vmem>>, %arg4: memref<128x32xf32, #tpu.memory_space<vmem>>, %arg5: memref<1x32xf32, #tpu.memory_space<vmem>>, %arg6: memref<2x64xf32, #tpu.memory_space<vmem>>) attributes {dimension_semantics = [#tpu.dimension_semantics<parallel>], iteration_bounds = array<i64: 1>, scalar_prefetch = 0 : i64, scratch_operands = 0 : i64, tpu.core_type = #tpu.core_type<tc>, window_params = [{transform_indices = @transform_0, window_bounds = array<i64: 2, 32>}, {pipeline_mode = #tpu.pipeline_mode<synchronous>, transform_indices = @transform_1, window_bounds = array<i64: 32, 96>}, {pipeline_mode = #tpu.pipeline_mode<synchronous>, transform_indices = @transform_2, window_bounds = array<i64: 32, 128>}, {pipeline_mode = #tpu.pipeline_mode<synchronous>, transform_indices = @transform_3, window_bounds = array<i64: 128, 32>}, {pipeline_mode = #tpu.pipeline_mode<synchronous>, transform_indices = @transform_4, window_bounds = array<i64: 1, 32>}, {transform_indices = @transform_5, window_bounds = array<i64: 2, 64>}]} {
    %c0 = arith.constant 0 : index
    %c0_0 = arith.constant 0 : index
    %0 = vector.load %arg1[%c0, %c0_0] : memref<2x32xf32, #tpu.memory_space<vmem>>, vector<2x32xf32>
    %c0_1 = arith.constant 0 : index
    %c0_2 = arith.constant 0 : index
    %1 = vector.load %arg3[%c0_1, %c0_2] : memref<32x128xf32, #tpu.memory_space<vmem>>, vector<32x128xf32>
    %c0_3 = arith.constant 0 : index
    %c0_4 = arith.constant 0 : index
    %2 = vector.load %arg4[%c0_3, %c0_4] : memref<128x32xf32, #tpu.memory_space<vmem>>, vector<128x32xf32>
    %c0_5 = arith.constant 0 : index
    %c0_6 = arith.constant 0 : index
    %3 = vector.load %arg5[%c0_5, %c0_6] : memref<1x32xf32, #tpu.memory_space<vmem>>, vector<1x32xf32>
    %c0_7 = arith.constant 0 : index
    %c0_8 = arith.constant 0 : index
    %4 = vector.load %arg2[%c0_7, %c0_8] : memref<32x96xf32, #tpu.memory_space<vmem>>, vector<32x96xf32>
    %cst = arith.constant dense<0.000000e+00> : vector<2x96xf32>
    %5 = tpu.matmul %0, %4, %cst {dimension_numbers = #tpu.dot_dimension_numbers<[1], [0], [0], [1], [0, 0, 1, 1], [], []>} : vector<2x32xf32>, vector<32x96xf32>, vector<2x96xf32> -> vector<2x96xf32>
    %6 = vector.extract_strided_slice %5 {offsets = [0, 0], sizes = [2, 32], strides = [1, 1]} : vector<2x96xf32> to vector<2x32xf32>
    %7 = vector.broadcast %3 : vector<1x32xf32> to vector<2x32xf32>
    %8 = arith.addf %6, %7 : vector<2x32xf32>
    %9 = vector.extract_strided_slice %5 {offsets = [0, 32], sizes = [2, 32], strides = [1, 1]} : vector<2x96xf32> to vector<2x32xf32>
    %cst_9 = arith.constant dense<0.000000e+00> : vector<2x128xf32>
    %10 = tpu.matmul %9, %1, %cst_9 {dimension_numbers = #tpu.dot_dimension_numbers<[1], [0], [0], [1], [0, 0, 1, 1], [], []>} : vector<2x32xf32>, vector<32x128xf32>, vector<2x128xf32> -> vector<2x128xf32>
    %cst_10 = arith.constant 0.000000e+00 : f32
    %11 = vector.broadcast %cst_10 : f32 to vector<2x128xf32>
    %12 = arith.cmpf ogt, %10, %11 : vector<2x128xf32>
    %cst_11 = arith.constant 2.000000e-01 : f32
    %13 = vector.broadcast %cst_11 : f32 to vector<2x128xf32>
    %14 = arith.mulf %13, %10 : vector<2x128xf32>
    %15 = arith.select %12, %10, %14 : vector<2x128xi1>, vector<2x128xf32>
    %cst_12 = arith.constant dense<0.000000e+00> : vector<2x32xf32>
    %16 = tpu.matmul %15, %2, %cst_12 {dimension_numbers = #tpu.dot_dimension_numbers<[1], [0], [0], [1], [0, 0, 1, 1], [], []>} : vector<2x128xf32>, vector<128x32xf32>, vector<2x32xf32> -> vector<2x32xf32>
    %17 = arith.addf %8, %16 : vector<2x32xf32>
    %cst_13 = arith.constant 0.000000e+00 : f32
    %18 = vector.broadcast %cst_13 : f32 to vector<2x32xf32>
    %19 = arith.cmpf ogt, %17, %18 : vector<2x32xf32>
    %cst_14 = arith.constant 2.000000e-01 : f32
    %20 = vector.broadcast %cst_14 : f32 to vector<2x32xf32>
    %21 = arith.mulf %20, %17 : vector<2x32xf32>
    %22 = arith.select %19, %17, %21 : vector<2x32xi1>, vector<2x32xf32>
    %23 = vector.extract_strided_slice %5 {offsets = [0, 64], sizes = [2, 32], strides = [1, 1]} : vector<2x96xf32> to vector<2x32xf32>
    %cst_15 = arith.constant dense<0.000000e+00> : vector<2x128xf32>
    %24 = tpu.matmul %23, %1, %cst_15 {dimension_numbers = #tpu.dot_dimension_numbers<[1], [0], [0], [1], [0, 0, 1, 1], [], []>} : vector<2x32xf32>, vector<32x128xf32>, vector<2x128xf32> -> vector<2x128xf32>
    %cst_16 = arith.constant 0.000000e+00 : f32
    %25 = vector.broadcast %cst_16 : f32 to vector<2x128xf32>
    %26 = arith.cmpf ogt, %24, %25 : vector<2x128xf32>
    %cst_17 = arith.constant 2.000000e-01 : f32
    %27 = vector.broadcast %cst_17 : f32 to vector<2x128xf32>
    %28 = arith.mulf %27, %24 : vector<2x128xf32>
    %29 = arith.select %26, %24, %28 : vector<2x128xi1>, vector<2x128xf32>
    %cst_18 = arith.constant dense<0.000000e+00> : vector<2x32xf32>
    %30 = tpu.matmul %29, %2, %cst_18 {dimension_numbers = #tpu.dot_dimension_numbers<[1], [0], [0], [1], [0, 0, 1, 1], [], []>} : vector<2x128xf32>, vector<128x32xf32>, vector<2x32xf32> -> vector<2x32xf32>
    %31 = arith.addf %8, %30 : vector<2x32xf32>
    %cst_19 = arith.constant 0.000000e+00 : f32
    %32 = vector.broadcast %cst_19 : f32 to vector<2x32xf32>
    %33 = arith.cmpf ogt, %31, %32 : vector<2x32xf32>
    %cst_20 = arith.constant 2.000000e-01 : f32
    %34 = vector.broadcast %cst_20 : f32 to vector<2x32xf32>
    %35 = arith.mulf %34, %31 : vector<2x32xf32>
    %36 = arith.select %33, %31, %35 : vector<2x32xi1>, vector<2x32xf32>
    %37 = tpu.concatenate %22, %36 in 1 : vector<2x32xf32>, vector<2x32xf32> -> vector<2x64xf32>
    %c0_21 = arith.constant 0 : index
    %c0_22 = arith.constant 0 : index
    %38 = vector.load %arg6[%c0_21, %c0_22] : memref<2x64xf32, #tpu.memory_space<vmem>>, vector<2x64xf32>
    tpu.vector_store %arg6[%c0_21, %c0_22], %37 {strides = array<i32>} : memref<2x64xf32, #tpu.memory_space<vmem>>, vector<2x64xf32>,
    return
  }
  func.func @transform_0(%arg0: i32) -> (i32, i32) {
    %c0_i32 = arith.constant 0 : i32
    %c0_i32_0 = arith.constant 0 : i32
    return %arg0, %c0_i32 : i32, i32
  }
  func.func @transform_1(%arg0: i32) -> (i32, i32) {
    %c0_i32 = arith.constant 0 : i32
    %c0_i32_0 = arith.constant 0 : i32
    %c0_i32_1 = arith.constant 0 : i32
    return %c0_i32, %c0_i32_0 : i32, i32
  }
  func.func @transform_2(%arg0: i32) -> (i32, i32) {
    %c0_i32 = arith.constant 0 : i32
    %c0_i32_0 = arith.constant 0 : i32
    %c0_i32_1 = arith.constant 0 : i32
    return %c0_i32, %c0_i32_0 : i32, i32
  }
  func.func @transform_3(%arg0: i32) -> (i32, i32) {
    %c0_i32 = arith.constant 0 : i32
    %c0_i32_0 = arith.constant 0 : i32
    %c0_i32_1 = arith.constant 0 : i32
    return %c0_i32, %c0_i32_0 : i32, i32
  }
  func.func @transform_4(%arg0: i32) -> (i32, i32) {
    %c0_i32 = arith.constant 0 : i32
    %c0_i32_0 = arith.constant 0 : i32
    %c0_i32_1 = arith.constant 0 : i32
    return %c0_i32, %c0_i32_0 : i32, i32
  }
  func.func @transform_5(%arg0: i32) -> (i32, i32) {
    %c0_i32 = arith.constant 0 : i32
    %c0_i32_0 = arith.constant 0 : i32
    return %arg0, %c0_i32 : i32, i32
  }
}

module attributes {stable_mosaic.version = 11 : i64} {
  func.func @_fused_layer_kernel(%arg0: i32, %arg1: memref<4x32xf32, #tpu.memory_space<vmem>>, %arg2: memref<32x96xf32, #tpu.memory_space<vmem>>, %arg3: memref<32x128xf32, #tpu.memory_space<vmem>>, %arg4: memref<128x32xf32, #tpu.memory_space<vmem>>, %arg5: memref<1x32xf32, #tpu.memory_space<vmem>>, %arg6: memref<4x64xf32, #tpu.memory_space<vmem>>) attributes {dimension_semantics = [#tpu.dimension_semantics<parallel>], iteration_bounds = array<i64: 1>, scalar_prefetch = 0 : i64, scratch_operands = 0 : i64, tpu.core_type = #tpu.core_type<tc>, window_params = [{transform_indices = @transform_0, window_bounds = array<i64: 4, 32>}, {pipeline_mode = #tpu.pipeline_mode<synchronous>, transform_indices = @transform_1, window_bounds = array<i64: 32, 96>}, {pipeline_mode = #tpu.pipeline_mode<synchronous>, transform_indices = @transform_2, window_bounds = array<i64: 32, 128>}, {pipeline_mode = #tpu.pipeline_mode<synchronous>, transform_indices = @transform_3, window_bounds = array<i64: 128, 32>}, {pipeline_mode = #tpu.pipeline_mode<synchronous>, transform_indices = @transform_4, window_bounds = array<i64: 1, 32>}, {transform_indices = @transform_5, window_bounds = array<i64: 4, 64>}]} {
    %c0 = arith.constant 0 : index
    %c0_0 = arith.constant 0 : index
    %0 = vector.load %arg1[%c0, %c0_0] : memref<4x32xf32, #tpu.memory_space<vmem>>, vector<4x32xf32>
    %c0_1 = arith.constant 0 : index
    %c0_2 = arith.constant 0 : index
    %1 = vector.load %arg3[%c0_1, %c0_2] : memref<32x128xf32, #tpu.memory_space<vmem>>, vector<32x128xf32>
    %c0_3 = arith.constant 0 : index
    %c0_4 = arith.constant 0 : index
    %2 = vector.load %arg4[%c0_3, %c0_4] : memref<128x32xf32, #tpu.memory_space<vmem>>, vector<128x32xf32>
    %c0_5 = arith.constant 0 : index
    %c0_6 = arith.constant 0 : index
    %3 = vector.load %arg5[%c0_5, %c0_6] : memref<1x32xf32, #tpu.memory_space<vmem>>, vector<1x32xf32>
    %c0_7 = arith.constant 0 : index
    %c0_8 = arith.constant 0 : index
    %4 = vector.load %arg2[%c0_7, %c0_8] : memref<32x96xf32, #tpu.memory_space<vmem>>, vector<32x96xf32>
    %cst = arith.constant dense<0.000000e+00> : vector<4x96xf32>
    %5 = tpu.matmul %0, %4, %cst {dimension_numbers = #tpu.dot_dimension_numbers<[1], [0], [0], [1], [0, 0, 1, 1], [], []>} : vector<4x32xf32>, vector<32x96xf32>, vector<4x96xf32> -> vector<4x96xf32>
    %6 = vector.extract_strided_slice %5 {offsets = [0, 0], sizes = [4, 32], strides = [1, 1]} : vector<4x96xf32> to vector<4x32xf32>
    %7 = vector.broadcast %3 : vector<1x32xf32> to vector<4x32xf32>
    %8 = arith.addf %6, %7 : vector<4x32xf32>
    %9 = vector.extract_strided_slice %5 {offsets = [0, 32], sizes = [4, 32], strides = [1, 1]} : vector<4x96xf32> to vector<4x32xf32>
    %cst_9 = arith.constant dense<0.000000e+00> : vector<4x128xf32>
    %10 = tpu.matmul %9, %1, %cst_9 {dimension_numbers = #tpu.dot_dimension_numbers<[1], [0], [0], [1], [0, 0, 1, 1], [], []>} : vector<4x32xf32>, vector<32x128xf32>, vector<4x128xf32> -> vector<4x128xf32>
    %cst_10 = arith.constant 0.000000e+00 : f32
    %11 = vector.broadcast %cst_10 : f32 to vector<4x128xf32>
    %12 = arith.cmpf ogt, %10, %11 : vector<4x128xf32>
    %cst_11 = arith.constant 2.000000e-01 : f32
    %13 = vector.broadcast %cst_11 : f32 to vector<4x128xf32>
    %14 = arith.mulf %13, %10 : vector<4x128xf32>
    %15 = arith.select %12, %10, %14 : vector<4x128xi1>, vector<4x128xf32>
    %cst_12 = arith.constant dense<0.000000e+00> : vector<4x32xf32>
    %16 = tpu.matmul %15, %2, %cst_12 {dimension_numbers = #tpu.dot_dimension_numbers<[1], [0], [0], [1], [0, 0, 1, 1], [], []>} : vector<4x128xf32>, vector<128x32xf32>, vector<4x32xf32> -> vector<4x32xf32>
    %17 = arith.addf %8, %16 : vector<4x32xf32>
    %cst_13 = arith.constant 0.000000e+00 : f32
    %18 = vector.broadcast %cst_13 : f32 to vector<4x32xf32>
    %19 = arith.cmpf ogt, %17, %18 : vector<4x32xf32>
    %cst_14 = arith.constant 2.000000e-01 : f32
    %20 = vector.broadcast %cst_14 : f32 to vector<4x32xf32>
    %21 = arith.mulf %20, %17 : vector<4x32xf32>
    %22 = arith.select %19, %17, %21 : vector<4x32xi1>, vector<4x32xf32>
    %23 = vector.extract_strided_slice %5 {offsets = [0, 64], sizes = [4, 32], strides = [1, 1]} : vector<4x96xf32> to vector<4x32xf32>
    %cst_15 = arith.constant dense<0.000000e+00> : vector<4x128xf32>
    %24 = tpu.matmul %23, %1, %cst_15 {dimension_numbers = #tpu.dot_dimension_numbers<[1], [0], [0], [1], [0, 0, 1, 1], [], []>} : vector<4x32xf32>, vector<32x128xf32>, vector<4x128xf32> -> vector<4x128xf32>
    %cst_16 = arith.constant 0.000000e+00 : f32
    %25 = vector.broadcast %cst_16 : f32 to vector<4x128xf32>
    %26 = arith.cmpf ogt, %24, %25 : vector<4x128xf32>
    %cst_17 = arith.constant 2.000000e-01 : f32
    %27 = vector.broadcast %cst_17 : f32 to vector<4x128xf32>
    %28 = arith.mulf %27, %24 : vector<4x128xf32>
    %29 = arith.select %26, %24, %28 : vector<4x128xi1>, vector<4x128xf32>
    %cst_18 = arith.constant dense<0.000000e+00> : vector<4x32xf32>
    %30 = tpu.matmul %29, %2, %cst_18 {dimension_numbers = #tpu.dot_dimension_numbers<[1], [0], [0], [1], [0, 0, 1, 1], [], []>} : vector<4x128xf32>, vector<128x32xf32>, vector<4x32xf32> -> vector<4x32xf32>
    %31 = arith.addf %8, %30 : vector<4x32xf32>
    %cst_19 = arith.constant 0.000000e+00 : f32
    %32 = vector.broadcast %cst_19 : f32 to vector<4x32xf32>
    %33 = arith.cmpf ogt, %31, %32 : vector<4x32xf32>
    %cst_20 = arith.constant 2.000000e-01 : f32
    %34 = vector.broadcast %cst_20 : f32 to vector<4x32xf32>
    %35 = arith.mulf %34, %31 : vector<4x32xf32>
    %36 = arith.select %33, %31, %35 : vector<4x32xi1>, vector<4x32xf32>
    %37 = tpu.concatenate %22, %36 in 1 : vector<4x32xf32>, vector<4x32xf32> -> vector<4x64xf32>
    %c0_21 = arith.constant 0 : index
    %c0_22 = arith.constant 0 : index
    %38 = vector.load %arg6[%c0_21, %c0_22] : memref<4x64xf32, #tpu.memory_space<vmem>>, vector<4x64xf32>
    tpu.vector_store %arg6[%c0_21, %c0_22], %37 {strides = array<i32>} : memref<4x64xf32, #tpu.memory_space<vmem>>, vector<4x64xf32>,
    return
  }
  func.func @transform_0(%arg0: i32) -> (i32, i32) {
    %c0_i32 = arith.constant 0 : i32
    %c0_i32_0 = arith.constant 0 : i32
    return %arg0, %c0_i32 : i32, i32
  }
  func.func @transform_1(%arg0: i32) -> (i32, i32) {
    %c0_i32 = arith.constant 0 : i32
    %c0_i32_0 = arith.constant 0 : i32
    %c0_i32_1 = arith.constant 0 : i32
    return %c0_i32, %c0_i32_0 : i32, i32
  }
  func.func @transform_2(%arg0: i32) -> (i32, i32) {
    %c0_i32 = arith.constant 0 : i32
    %c0_i32_0 = arith.constant 0 : i32
    %c0_i32_1 = arith.constant 0 : i32
    return %c0_i32, %c0_i32_0 : i32, i32
  }
  func.func @transform_3(%arg0: i32) -> (i32, i32) {
    %c0_i32 = arith.constant 0 : i32
    %c0_i32_0 = arith.constant 0 : i32
    %c0_i32_1 = arith.constant 0 : i32
    return %c0_i32, %c0_i32_0 : i32, i32
  }
  func.func @transform_4(%arg0: i32) -> (i32, i32) {
    %c0_i32 = arith.constant 0 : i32
    %c0_i32_0 = arith.constant 0 : i32
    %c0_i32_1 = arith.constant 0 : i32
    return %c0_i32, %c0_i32_0 : i32, i32
  }
  func.func @transform_5(%arg0: i32) -> (i32, i32) {
    %c0_i32 = arith.constant 0 : i32
    %c0_i32_0 = arith.constant 0 : i32
    return %arg0, %c0_i32 : i32, i32
  }
}

module attributes {stable_mosaic.version = 11 : i64} {
  func.func @_fused_layer_kernel(%arg0: i32, %arg1: memref<8x32xf32, #tpu.memory_space<vmem>>, %arg2: memref<32x144xf32, #tpu.memory_space<vmem>>, %arg3: memref<32x128xf32, #tpu.memory_space<vmem>>, %arg4: memref<128x16xf32, #tpu.memory_space<vmem>>, %arg5: memref<1x16xf32, #tpu.memory_space<vmem>>, %arg6: memref<8x64xf32, #tpu.memory_space<vmem>>) attributes {dimension_semantics = [#tpu.dimension_semantics<parallel>], iteration_bounds = array<i64: 1>, scalar_prefetch = 0 : i64, scratch_operands = 0 : i64, tpu.core_type = #tpu.core_type<tc>, window_params = [{transform_indices = @transform_0, window_bounds = array<i64: 8, 32>}, {pipeline_mode = #tpu.pipeline_mode<synchronous>, transform_indices = @transform_1, window_bounds = array<i64: 32, 144>}, {pipeline_mode = #tpu.pipeline_mode<synchronous>, transform_indices = @transform_2, window_bounds = array<i64: 32, 128>}, {pipeline_mode = #tpu.pipeline_mode<synchronous>, transform_indices = @transform_3, window_bounds = array<i64: 128, 16>}, {pipeline_mode = #tpu.pipeline_mode<synchronous>, transform_indices = @transform_4, window_bounds = array<i64: 1, 16>}, {transform_indices = @transform_5, window_bounds = array<i64: 8, 64>}]} {
    %c0 = arith.constant 0 : index
    %c0_0 = arith.constant 0 : index
    %0 = vector.load %arg1[%c0, %c0_0] : memref<8x32xf32, #tpu.memory_space<vmem>>, vector<8x32xf32>
    %c0_1 = arith.constant 0 : index
    %c0_2 = arith.constant 0 : index
    %1 = vector.load %arg3[%c0_1, %c0_2] : memref<32x128xf32, #tpu.memory_space<vmem>>, vector<32x128xf32>
    %c0_3 = arith.constant 0 : index
    %c0_4 = arith.constant 0 : index
    %2 = vector.load %arg4[%c0_3, %c0_4] : memref<128x16xf32, #tpu.memory_space<vmem>>, vector<128x16xf32>
    %c0_5 = arith.constant 0 : index
    %c0_6 = arith.constant 0 : index
    %3 = vector.load %arg5[%c0_5, %c0_6] : memref<1x16xf32, #tpu.memory_space<vmem>>, vector<1x16xf32>
    %c0_7 = arith.constant 0 : index
    %c0_8 = arith.constant 0 : index
    %4 = vector.load %arg2[%c0_7, %c0_8] : memref<32x144xf32, #tpu.memory_space<vmem>>, vector<32x144xf32>
    %cst = arith.constant dense<0.000000e+00> : vector<8x144xf32>
    %5 = tpu.matmul %0, %4, %cst {dimension_numbers = #tpu.dot_dimension_numbers<[1], [0], [0], [1], [0, 0, 1, 1], [], []>} : vector<8x32xf32>, vector<32x144xf32>, vector<8x144xf32> -> vector<8x144xf32>
    %6 = vector.extract_strided_slice %5 {offsets = [0, 0], sizes = [8, 16], strides = [1, 1]} : vector<8x144xf32> to vector<8x16xf32>
    %7 = vector.broadcast %3 : vector<1x16xf32> to vector<8x16xf32>
    %8 = arith.addf %6, %7 : vector<8x16xf32>
    %9 = vector.extract_strided_slice %5 {offsets = [0, 16], sizes = [8, 32], strides = [1, 1]} : vector<8x144xf32> to vector<8x32xf32>
    %cst_9 = arith.constant dense<0.000000e+00> : vector<8x128xf32>
    %10 = tpu.matmul %9, %1, %cst_9 {dimension_numbers = #tpu.dot_dimension_numbers<[1], [0], [0], [1], [0, 0, 1, 1], [], []>} : vector<8x32xf32>, vector<32x128xf32>, vector<8x128xf32> -> vector<8x128xf32>
    %cst_10 = arith.constant 0.000000e+00 : f32
    %11 = vector.broadcast %cst_10 : f32 to vector<8x128xf32>
    %12 = arith.cmpf ogt, %10, %11 : vector<8x128xf32>
    %cst_11 = arith.constant 2.000000e-01 : f32
    %13 = vector.broadcast %cst_11 : f32 to vector<8x128xf32>
    %14 = arith.mulf %13, %10 : vector<8x128xf32>
    %15 = arith.select %12, %10, %14 : vector<8x128xi1>, vector<8x128xf32>
    %cst_12 = arith.constant dense<0.000000e+00> : vector<8x16xf32>
    %16 = tpu.matmul %15, %2, %cst_12 {dimension_numbers = #tpu.dot_dimension_numbers<[1], [0], [0], [1], [0, 0, 1, 1], [], []>} : vector<8x128xf32>, vector<128x16xf32>, vector<8x16xf32> -> vector<8x16xf32>
    %17 = arith.addf %8, %16 : vector<8x16xf32>
    %18 = vector.extract_strided_slice %5 {offsets = [0, 48], sizes = [8, 32], strides = [1, 1]} : vector<8x144xf32> to vector<8x32xf32>
    %cst_13 = arith.constant dense<0.000000e+00> : vector<8x128xf32>
    %19 = tpu.matmul %18, %1, %cst_13 {dimension_numbers = #tpu.dot_dimension_numbers<[1], [0], [0], [1], [0, 0, 1, 1], [], []>} : vector<8x32xf32>, vector<32x128xf32>, vector<8x128xf32> -> vector<8x128xf32>
    %cst_14 = arith.constant 0.000000e+00 : f32
    %20 = vector.broadcast %cst_14 : f32 to vector<8x128xf32>
    %21 = arith.cmpf ogt, %19, %20 : vector<8x128xf32>
    %cst_15 = arith.constant 2.000000e-01 : f32
    %22 = vector.broadcast %cst_15 : f32 to vector<8x128xf32>
    %23 = arith.mulf %22, %19 : vector<8x128xf32>
    %24 = arith.select %21, %19, %23 : vector<8x128xi1>, vector<8x128xf32>
    %cst_16 = arith.constant dense<0.000000e+00> : vector<8x16xf32>
    %25 = tpu.matmul %24, %2, %cst_16 {dimension_numbers = #tpu.dot_dimension_numbers<[1], [0], [0], [1], [0, 0, 1, 1], [], []>} : vector<8x128xf32>, vector<128x16xf32>, vector<8x16xf32> -> vector<8x16xf32>
    %26 = arith.addf %8, %25 : vector<8x16xf32>
    %27 = vector.extract_strided_slice %5 {offsets = [0, 80], sizes = [8, 32], strides = [1, 1]} : vector<8x144xf32> to vector<8x32xf32>
    %cst_17 = arith.constant dense<0.000000e+00> : vector<8x128xf32>
    %28 = tpu.matmul %27, %1, %cst_17 {dimension_numbers = #tpu.dot_dimension_numbers<[1], [0], [0], [1], [0, 0, 1, 1], [], []>} : vector<8x32xf32>, vector<32x128xf32>, vector<8x128xf32> -> vector<8x128xf32>
    %cst_18 = arith.constant 0.000000e+00 : f32
    %29 = vector.broadcast %cst_18 : f32 to vector<8x128xf32>
    %30 = arith.cmpf ogt, %28, %29 : vector<8x128xf32>
    %cst_19 = arith.constant 2.000000e-01 : f32
    %31 = vector.broadcast %cst_19 : f32 to vector<8x128xf32>
    %32 = arith.mulf %31, %28 : vector<8x128xf32>
    %33 = arith.select %30, %28, %32 : vector<8x128xi1>, vector<8x128xf32>
    %cst_20 = arith.constant dense<0.000000e+00> : vector<8x16xf32>
    %34 = tpu.matmul %33, %2, %cst_20 {dimension_numbers = #tpu.dot_dimension_numbers<[1], [0], [0], [1], [0, 0, 1, 1], [], []>} : vector<8x128xf32>, vector<128x16xf32>, vector<8x16xf32> -> vector<8x16xf32>
    %35 = arith.addf %8, %34 : vector<8x16xf32>
    %36 = vector.extract_strided_slice %5 {offsets = [0, 112], sizes = [8, 32], strides = [1, 1]} : vector<8x144xf32> to vector<8x32xf32>
    %cst_21 = arith.constant dense<0.000000e+00> : vector<8x128xf32>
    %37 = tpu.matmul %36, %1, %cst_21 {dimension_numbers = #tpu.dot_dimension_numbers<[1], [0], [0], [1], [0, 0, 1, 1], [], []>} : vector<8x32xf32>, vector<32x128xf32>, vector<8x128xf32> -> vector<8x128xf32>
    %cst_22 = arith.constant 0.000000e+00 : f32
    %38 = vector.broadcast %cst_22 : f32 to vector<8x128xf32>
    %39 = arith.cmpf ogt, %37, %38 : vector<8x128xf32>
    %cst_23 = arith.constant 2.000000e-01 : f32
    %40 = vector.broadcast %cst_23 : f32 to vector<8x128xf32>
    %41 = arith.mulf %40, %37 : vector<8x128xf32>
    %42 = arith.select %39, %37, %41 : vector<8x128xi1>, vector<8x128xf32>
    %cst_24 = arith.constant dense<0.000000e+00> : vector<8x16xf32>
    %43 = tpu.matmul %42, %2, %cst_24 {dimension_numbers = #tpu.dot_dimension_numbers<[1], [0], [0], [1], [0, 0, 1, 1], [], []>} : vector<8x128xf32>, vector<128x16xf32>, vector<8x16xf32> -> vector<8x16xf32>
    %44 = arith.addf %8, %43 : vector<8x16xf32>
    %45 = tpu.concatenate %17, %26, %35, %44 in 1 : vector<8x16xf32>, vector<8x16xf32>, vector<8x16xf32>, vector<8x16xf32> -> vector<8x64xf32>
    %c0_25 = arith.constant 0 : index
    %c0_26 = arith.constant 0 : index
    %46 = vector.load %arg6[%c0_25, %c0_26] : memref<8x64xf32, #tpu.memory_space<vmem>>, vector<8x64xf32>
    tpu.vector_store %arg6[%c0_25, %c0_26], %45 {strides = array<i32>} : memref<8x64xf32, #tpu.memory_space<vmem>>, vector<8x64xf32>,
    return
  }
  func.func @transform_0(%arg0: i32) -> (i32, i32) {
    %c0_i32 = arith.constant 0 : i32
    %c0_i32_0 = arith.constant 0 : i32
    return %arg0, %c0_i32 : i32, i32
  }
  func.func @transform_1(%arg0: i32) -> (i32, i32) {
    %c0_i32 = arith.constant 0 : i32
    %c0_i32_0 = arith.constant 0 : i32
    %c0_i32_1 = arith.constant 0 : i32
    return %c0_i32, %c0_i32_0 : i32, i32
  }
  func.func @transform_2(%arg0: i32) -> (i32, i32) {
    %c0_i32 = arith.constant 0 : i32
    %c0_i32_0 = arith.constant 0 : i32
    %c0_i32_1 = arith.constant 0 : i32
    return %c0_i32, %c0_i32_0 : i32, i32
  }
  func.func @transform_3(%arg0: i32) -> (i32, i32) {
    %c0_i32 = arith.constant 0 : i32
    %c0_i32_0 = arith.constant 0 : i32
    %c0_i32_1 = arith.constant 0 : i32
    return %c0_i32, %c0_i32_0 : i32, i32
  }
  func.func @transform_4(%arg0: i32) -> (i32, i32) {
    %c0_i32 = arith.constant 0 : i32
    %c0_i32_0 = arith.constant 0 : i32
    %c0_i32_1 = arith.constant 0 : i32
    return %c0_i32, %c0_i32_0 : i32, i32
  }
  func.func @transform_5(%arg0: i32) -> (i32, i32) {
    %c0_i32 = arith.constant 0 : i32
    %c0_i32_0 = arith.constant 0 : i32
    return %arg0, %c0_i32 : i32, i32
  }
}

</mosaic_0001>

<bundles_post_ra>
// kernel: tree_gcn_generator.6
= control target key start
LH: loop header
LB: loop body
LE: loop exit
PB: predicated region body
PF: predicated region fallthrough
CT: control target
= control target key end

     0   :  { %vm46_vm0 = vcmask 261120   ;;  %s195_s9 = smov 64   ;;  %s196_s10 = smov 96   ;;  %vm182_vm5 = vcmask 519168   ;;  %s318_s1 = inlined_call_operand.vmem [shape: f32[32,96], index: 1, kind: input, shape index: {}]   ;;  %s319_s0 = inlined_call_operand.vmem [shape: f32[4,32], index: 0, kind: input, shape index: {}]   ;;  %s320_s4 = inlined_call_operand.vmem [shape: f32[1,32], index: 4, kind: input, shape index: {}]   ;;  %s321_s2 = inlined_call_operand.vmem [shape: f32[32,128], index: 2, kind: input, shape index: {}]   ;;  %s322_s3 = inlined_call_operand.vmem [shape: f32[128,32], index: 3, kind: input, shape index: {}]   ;;  %s323_s5 = inlined_call_operand.vmem [shape: f32[4,64], index: 5, kind: output, shape index: {}]  }
   0x1   :  { %v45_v0 = vld [vmem:[%s318_s1 + $0x18] sm:$0xff]  ;;  %v44_v1 = vld [vmem:[%s318_s1 + $0x10] sm:$0xff]  ;;  %v43_v2 = vld [vmem:[%s318_s1 + $0x8] sm:$0xff] }
   0x2   :  { %62 = vmatpush.msra.mxu1 %v45_v0  ;;  %v42_v3 = vld [vmem:[%s318_s1] sm:$0xff]  ;;  %v24_v5 = vld [vmem:[%s321_s2 + $0x18] sm:$0xff]  ;;  %v23_v6 = vld [vmem:[%s321_s2 + $0x10] sm:$0xff] }
   0x3   :  { %v20_v4 = vld [vmem:[%s319_s0] sm:$0xf]  ;;  %142 = vmatpush.msra.mxu3 %v24_v5  ;;  %v22_v7 = vld [vmem:[%s321_s2 + $0x8] sm:$0xff]  ;;  %v40_v10 = vld [vmem:[%s322_s3 + $0x78] sm:$0xff] }
   0x4   :  { %63 = vmatpush.msra.mxu1 %v44_v1  ;;  %v21_v8 = vld [vmem:[%s321_s2] sm:$0xff]  ;;  %v39_v11 = vld [vmem:[%s322_s3 + $0x70] sm:$0xff]  ;;  %153 = vmatpush.msra.mxu0 %v40_v10  ;;  %v38_v12 = vld [vmem:[%s322_s3 + $0x68] sm:$0xff] }
   0x5   :  { %143 = vmatpush.msra.mxu3 %v23_v6  ;;  %102 = vmatpush.msra.mxu2 %v40_v10  ;;  %v37_v13 = vld [vmem:[%s322_s3 + $0x60] sm:$0xff]  ;;  %v36_v14 = vld [vmem:[%s322_s3 + $0x58] sm:$0xff]  ;;  %v35_v15 = vld [vmem:[%s322_s3 + $0x50] sm:$0xff] }
   0x6   :  { %64 = vmatpush.msra.mxu1 %v43_v2  ;;  %154 = vmatpush.msra.mxu0 %v39_v11  ;;  %v34_v16 = vld [vmem:[%s322_s3 + $0x48] sm:$0xff]  ;;  %v33_v17 = vld [vmem:[%s322_s3 + $0x40] sm:$0xff]  ;;  %v32_v18 = vld [vmem:[%s322_s3 + $0x38] sm:$0xff] }
   0x7   :  { %144 = vmatpush.msra.mxu3 %v22_v7  ;;  %103 = vmatpush.msra.mxu2 %v39_v11  ;;  %v31_v19 = vld [vmem:[%s322_s3 + $0x30] sm:$0xff]  ;;  %v30_v20 = vld [vmem:[%s322_s3 + $0x28] sm:$0xff]  ;;  %v29_v21 = vld [vmem:[%s322_s3 + $0x20] sm:$0xff] }
   0x8   :  { %65 = vmatpush.msra.mxu1 %v42_v3  ;;  %155 = vmatpush.msra.mxu0 %v38_v12  ;;  %v28_v22 = vld [vmem:[%s322_s3 + $0x18] sm:$0xff]  ;;  %v27_v24 = vld [vmem:[%s322_s3 + $0x10] sm:$0xff]  ;;  %v26_v26 = vld [vmem:[%s322_s3 + $0x8] sm:$0xff] }
   0x9   :  { %188 = vmatmul.msk.f32.vlgmr.msra.gmra.mxu1 %vm46_vm0, %v20_v4  ;;  %145 = vmatpush.msra.mxu3 %v21_v8  ;;  %v25_v27 = vld [vmem:[%s322_s3] sm:$0xff]  ;;  %s197_s3 = smov 32  }
   0xa   :  { %91 = vmatpush.msrb.mxu1 %v24_v5  ;;  %104 = vmatpush.msra.mxu2 %v38_v12  ;;  %v194_v34 = vld [vmem:[%s320_s4] ss:$0 sm:$0xff] }
   0xb   :  { %156 = vmatpush.msra.mxu0 %v37_v13 }
   0xc   :  { %92 = vmatpush.msrb.mxu1 %v23_v6  ;;  %105 = vmatpush.msra.mxu2 %v37_v13 }
   0xd   :  { %157 = vmatpush.msra.mxu0 %v36_v14 }
   0xe   :  { %93 = vmatpush.msrb.mxu1 %v22_v7  ;;  %106 = vmatpush.msra.mxu2 %v36_v14 }
   0xf   :  { %158 = vmatpush.msra.mxu0 %v35_v15 }
  0x10   :  { %94 = vmatpush.msrb.mxu1 %v21_v8  ;;  %107 = vmatpush.msra.mxu2 %v35_v15 }
  0x11   :  { %159 = vmatpush.msra.mxu0 %v34_v16 }
  0x12   :  { %108 = vmatpush.msra.mxu2 %v34_v16 }
  0x13   :  { %160 = vmatpush.msra.mxu0 %v33_v17 }
  0x14   :  { %109 = vmatpush.msra.mxu2 %v33_v17 }
  0x15   :  { %161 = vmatpush.msra.mxu0 %v32_v18 }
  0x16   :  { %110 = vmatpush.msra.mxu2 %v32_v18 }
  0x17   :  { %162 = vmatpush.msra.mxu0 %v31_v19 }
  0x18   :  { %111 = vmatpush.msra.mxu2 %v31_v19 }
  0x19   :  { %163 = vmatpush.msra.mxu0 %v30_v20 }
  0x1a   :  { %112 = vmatpush.msra.mxu2 %v30_v20 }
  0x1b   :  { %164 = vmatpush.msra.mxu0 %v29_v21 }
  0x1c   :  { %113 = vmatpush.msra.mxu2 %v29_v21 }
  0x1d   :  { %165 = vmatpush.msra.mxu0 %v28_v22 }
  0x1e   :  { %114 = vmatpush.msra.mxu2 %v28_v22 }
  0x1f   :  { %166 = vmatpush.msra.mxu0 %v27_v24 }
  0x20   :  { %115 = vmatpush.msra.mxu2 %v27_v24 }
  0x21   :  { %167 = vmatpush.msra.mxu0 %v26_v26 }
  0x22   :  { %116 = vmatpush.msra.mxu2 %v26_v26 }
  0x23   :  { %168 = vmatpush.msra.mxu0 %v25_v27 }
  0x24   :  { %117 = vmatpush.msra.mxu2 %v25_v27 }
  0x86   :  { %v256_v9 = vpop.f32.mrf.mxu1 }
  0x87   :  { %126 = vrot.lane.b32.xlu0 %v256_v9, %s195_s9  ;;  %v73_v35 = vadd.f32 %v194_v34, %v256_v9 }
  0x8f   :  { %75 = vrot.lane.b32.xlu0 %v256_v9, %s196_s10 }
  0xf9   :  { %v127_v23 = vpop.permute.xlu0 %126 }
  0xfa   :  { %190 = vmatmul.msk.f32.vlgmr.msra.gmra.mxu3 %vm46_vm0, %v127_v23 }
 0x101   :  { %v76_v25 = vpop.permute.xlu0 %75 }
 0x102   :  { %189 = vmatmul.msk.f32.vlgmr.msrb.gmra.mxu1 %vm46_vm0, %v76_v25 }
 0x17d   :  { %v147_v28 = vpop.f32.mrf.mxu3 }
 0x17e   :  { %vm150_vm1 = vcmp.gt.f32.partialorder %v147_v28, 0.0  ;;  %v151_v29 = vmul.f32 0.2, %v147_v28 }
 0x17f   :  { %v96_v30 = vpop.f32.mrf.mxu1 }
 0x180   :  { %vm99_vm2 = vcmp.gt.f32.partialorder %v96_v30, 0.0  ;;  %v100_v31 = vmul.f32 0.2, %v96_v30  ;;  %v152_v32 = vsel %vm150_vm1, %v147_v28, %v151_v29 }
 0x181   :  { %169 = vmatmul.f32.vlgmr.msra.gmra.mxu0 %v152_v32 }
 0x182   :  { %v101_v33 = vsel %vm99_vm2, %v96_v30, %v100_v31 }
 0x183   :  { %118 = vmatmul.f32.vlgmr.msra.gmra.mxu2 %v101_v33 }
 0x1fe   :  { %v170_v36 = vpop.f32.mrf.mxu0 }
 0x1ff   :  { %v173_v37 = vadd.f32 %v170_v36, %v73_v35 }
 0x201   :  { %vm174_vm3 = vcmp.gt.f32.partialorder %v173_v37, 0.0  ;;  %v175_v38 = vmul.f32 0.2, %v173_v37 }
 0x203   :  { %v176_v39 = vsel %vm174_vm3, %v173_v37, %v175_v38 }
 0x204   :  { %178 = vrot.lane.b32.xlu1 %v176_v39, %s197_s3 }
 0x206   :  { %v119_v40 = vpop.f32.mrf.mxu2 }
 0x207   :  { %v122_v41 = vadd.f32 %v119_v40, %v73_v35 }
 0x209   :  { %v124_v42 = vmul.f32 0.2, %v122_v41  ;;  %vm123_vm4 = vcmp.gt.f32.partialorder %v122_v41, 0.0 }
 0x20b   :  { %v125_v44 = vsel %vm123_vm4, %v122_v41, %v124_v42 }
 0x276   :  { %v179_v43 = vpop.permute.xlu1 %178 }
 0x277   :  { %v181_v45 = vsel %vm46_vm0, %v125_v44, %v179_v43 }
 0x278   :  { %183 = vst.msk [vmem:[%s323_s5] sm:$0xf] %vm182_vm5, %v181_v45 }

// kernel: tree_gcn_generator.4
= control target key start
LH: loop header
LB: loop body
LE: loop exit
PB: predicated region body
PF: predicated region fallthrough
CT: control target
= control target key end

     0   :  { %vm46_vm0 = vcmask 261120   ;;  %vm120_vm3 = vcmask 254976   ;;  %s242_s2 = inlined_call_operand.vmem [shape: f32[32,128], index: 2, kind: input, shape index: {}]   ;;  %s243_s3 = inlined_call_operand.vmem [shape: f32[128,32], index: 3, kind: input, shape index: {}]   ;;  %s244_s0 = inlined_call_operand.vmem [shape: f32[2,32], index: 0, kind: input, shape index: {}]   ;;  %s245_s1 = inlined_call_operand.vmem [shape: f32[32,32], index: 1, kind: input, shape index: {}]   ;;  %s246_s4 = inlined_call_operand.vmem [shape: f32[1,32], index: 4, kind: input, shape index: {}]   ;;  %s247_s5 = inlined_call_operand.vmem [shape: f32[2,32], index: 5, kind: output, shape index: {}]  }
   0x1   :  { %v24_v0 = vld [vmem:[%s242_s2 + $0x18] sm:$0xff]  ;;  %v23_v1 = vld [vmem:[%s242_s2 + $0x10] sm:$0xff]  ;;  %v22_v3 = vld [vmem:[%s242_s2 + $0x8] sm:$0xff] }
   0x2   :  { %62 = vmatpush.msra.mxu0 %v24_v0  ;;  %v40_v2 = vld [vmem:[%s243_s3 + $0x78] sm:$0xff]  ;;  %v39_v4 = vld [vmem:[%s243_s3 + $0x70] sm:$0xff]  ;;  %v38_v5 = vld [vmem:[%s243_s3 + $0x68] sm:$0xff] }
   0x3   :  { %73 = vmatpush.msra.mxu1 %v40_v2  ;;  %v21_v6 = vld [vmem:[%s242_s2] sm:$0xff]  ;;  %v45_v9 = vld [vmem:[%s245_s1 + $0x18] sm:$0xff]  ;;  %v44_v10 = vld [vmem:[%s245_s1 + $0x10] sm:$0xff] }
   0x4   :  { %63 = vmatpush.msra.mxu0 %v23_v1  ;;  %v20_v7 = vld [vmem:[%s244_s0] sm:$0x3]  ;;  %105 = vmatpush.msra.mxu2 %v45_v9  ;;  %v36_v11 = vld [vmem:[%s243_s3 + $0x58] sm:$0xff]  ;;  %v43_v12 = vld [vmem:[%s245_s1 + $0x8] sm:$0xff] }
   0x5   :  { %74 = vmatpush.msra.mxu1 %v39_v4  ;;  %v37_v8 = vld [vmem:[%s243_s3 + $0x60] sm:$0xff]  ;;  %v35_v13 = vld [vmem:[%s243_s3 + $0x50] sm:$0xff]  ;;  %v34_v15 = vld [vmem:[%s243_s3 + $0x48] sm:$0xff] }
   0x6   :  { %64 = vmatpush.msra.mxu0 %v22_v3  ;;  %106 = vmatpush.msra.mxu2 %v44_v10  ;;  %v42_v14 = vld [vmem:[%s245_s1] sm:$0xff]  ;;  %v32_v17 = vld [vmem:[%s243_s3 + $0x38] sm:$0xff]  ;;  %v31_v18 = vld [vmem:[%s243_s3 + $0x30] sm:$0xff] }
   0x7   :  { %75 = vmatpush.msra.mxu1 %v38_v5  ;;  %v33_v16 = vld [vmem:[%s243_s3 + $0x40] sm:$0xff]  ;;  %v30_v19 = vld [vmem:[%s243_s3 + $0x28] sm:$0xff]  ;;  %v28_v21 = vld [vmem:[%s243_s3 + $0x18] sm:$0xff] }
   0x8   :  { %65 = vmatpush.msra.mxu0 %v21_v6  ;;  %107 = vmatpush.msra.mxu2 %v43_v12  ;;  %v29_v20 = vld [vmem:[%s243_s3 + $0x20] sm:$0xff]  ;;  %v27_v22 = vld [vmem:[%s243_s3 + $0x10] sm:$0xff]  ;;  %v26_v23 = vld [vmem:[%s243_s3 + $0x8] sm:$0xff] }
   0x9   :  { %126 = vmatmul.msk.f32.vlgmr.msra.gmra.mxu0 %vm46_vm0, %v20_v7  ;;  %76 = vmatpush.msra.mxu1 %v37_v8  ;;  %v25_v24 = vld [vmem:[%s243_s3] sm:$0xff] }
   0xa   :  { %108 = vmatpush.msra.mxu2 %v42_v14  ;;  %v128_v29 = vld [vmem:[%s246_s4] ss:$0 sm:$0xff] }
   0xb   :  { %77 = vmatpush.msra.mxu1 %v36_v11  ;;  %127 = vmatmul.msk.f32.vlgmr.msra.gmra.mxu2 %vm46_vm0, %v20_v7 }
   0xd   :  { %78 = vmatpush.msra.mxu1 %v35_v13 }
   0xf   :  { %79 = vmatpush.msra.mxu1 %v34_v15 }
  0x11   :  { %80 = vmatpush.msra.mxu1 %v33_v16 }
  0x13   :  { %81 = vmatpush.msra.mxu1 %v32_v17 }
  0x15   :  { %82 = vmatpush.msra.mxu1 %v31_v18 }
  0x17   :  { %83 = vmatpush.msra.mxu1 %v30_v19 }
  0x19   :  { %84 = vmatpush.msra.mxu1 %v29_v20 }
  0x1b   :  { %85 = vmatpush.msra.mxu1 %v28_v21 }
  0x1d   :  { %86 = vmatpush.msra.mxu1 %v27_v22 }
  0x1f   :  { %87 = vmatpush.msra.mxu1 %v26_v23 }
  0x21   :  { %88 = vmatpush.msra.mxu1 %v25_v24 }
  0x86   :  { %v67_v25 = vpop.f32.mrf.mxu0 }
  0x87   :  { %vm70_vm1 = vcmp.gt.f32.partialorder %v67_v25, 0.0  ;;  %v71_v26 = vmul.f32 0.2, %v67_v25 }
  0x89   :  { %v72_v27 = vsel %vm70_vm1, %v67_v25, %v71_v26 }
  0x8a   :  { %89 = vmatmul.f32.vlgmr.msra.gmra.mxu1 %v72_v27 }
  0x8e   :  { %v110_v28 = vpop.f32.mrf.mxu2 }
 0x107   :  { %v90_v30 = vpop.f32.mrf.mxu1 }
 0x108   :  { %v111_v31 = vadd.f32 %v110_v28, %v90_v30 }
 0x10a   :  { %v116_v32 = vadd.f32 %v128_v29, %v111_v31 }
 0x10c   :  { %vm117_vm2 = vcmp.gt.f32.partialorder %v116_v32, 0.0  ;;  %v118_v33 = vmul.f32 0.2, %v116_v32 }
 0x10e   :  { %v119_v34 = vsel %vm117_vm2, %v116_v32, %v118_v33 }
 0x10f   :  { %121 = vst.msk [vmem:[%s247_s5] sm:$0x3] %vm120_vm3, %v119_v34 }

// kernel: tree_gcn_generator.5
= control target key start
LH: loop header
LB: loop body
LE: loop exit
PB: predicated region body
PF: predicated region fallthrough
CT: control target
= control target key end

     0   :  { %vm46_vm0 = vcmask 261120   ;;  %s195_s9 = smov 64   ;;  %s196_s10 = smov 96   ;;  %vm182_vm5 = vcmask 517120   ;;  %s318_s1 = inlined_call_operand.vmem [shape: f32[32,96], index: 1, kind: input, shape index: {}]   ;;  %s319_s0 = inlined_call_operand.vmem [shape: f32[2,32], index: 0, kind: input, shape index: {}]   ;;  %s320_s4 = inlined_call_operand.vmem [shape: f32[1,32], index: 4, kind: input, shape index: {}]   ;;  %s321_s2 = inlined_call_operand.vmem [shape: f32[32,128], index: 2, kind: input, shape index: {}]   ;;  %s322_s3 = inlined_call_operand.vmem [shape: f32[128,32], index: 3, kind: input, shape index: {}]   ;;  %s323_s5 = inlined_call_operand.vmem [shape: f32[2,64], index: 5, kind: output, shape index: {}]  }
   0x1   :  { %v45_v0 = vld [vmem:[%s318_s1 + $0x18] sm:$0xff]  ;;  %v44_v1 = vld [vmem:[%s318_s1 + $0x10] sm:$0xff]  ;;  %v43_v2 = vld [vmem:[%s318_s1 + $0x8] sm:$0xff] }
   0x2   :  { %62 = vmatpush.msra.mxu1 %v45_v0  ;;  %v42_v3 = vld [vmem:[%s318_s1] sm:$0xff]  ;;  %v24_v5 = vld [vmem:[%s321_s2 + $0x18] sm:$0xff]  ;;  %v23_v6 = vld [vmem:[%s321_s2 + $0x10] sm:$0xff] }
   0x3   :  { %v20_v4 = vld [vmem:[%s319_s0] sm:$0x3]  ;;  %142 = vmatpush.msra.mxu3 %v24_v5  ;;  %v22_v7 = vld [vmem:[%s321_s2 + $0x8] sm:$0xff]  ;;  %v40_v10 = vld [vmem:[%s322_s3 + $0x78] sm:$0xff] }
   0x4   :  { %63 = vmatpush.msra.mxu1 %v44_v1  ;;  %v21_v8 = vld [vmem:[%s321_s2] sm:$0xff]  ;;  %v39_v11 = vld [vmem:[%s322_s3 + $0x70] sm:$0xff]  ;;  %153 = vmatpush.msra.mxu0 %v40_v10  ;;  %v38_v12 = vld [vmem:[%s322_s3 + $0x68] sm:$0xff] }
   0x5   :  { %143 = vmatpush.msra.mxu3 %v23_v6  ;;  %102 = vmatpush.msra.mxu2 %v40_v10  ;;  %v37_v13 = vld [vmem:[%s322_s3 + $0x60] sm:$0xff]  ;;  %v36_v14 = vld [vmem:[%s322_s3 + $0x58] sm:$0xff]  ;;  %v35_v15 = vld [vmem:[%s322_s3 + $0x50] sm:$0xff] }
   0x6   :  { %64 = vmatpush.msra.mxu1 %v43_v2  ;;  %154 = vmatpush.msra.mxu0 %v39_v11  ;;  %v34_v16 = vld [vmem:[%s322_s3 + $0x48] sm:$0xff]  ;;  %v33_v17 = vld [vmem:[%s322_s3 + $0x40] sm:$0xff]  ;;  %v32_v18 = vld [vmem:[%s322_s3 + $0x38] sm:$0xff] }
   0x7   :  { %144 = vmatpush.msra.mxu3 %v22_v7  ;;  %103 = vmatpush.msra.mxu2 %v39_v11  ;;  %v31_v19 = vld [vmem:[%s322_s3 + $0x30] sm:$0xff]  ;;  %v30_v20 = vld [vmem:[%s322_s3 + $0x28] sm:$0xff]  ;;  %v29_v21 = vld [vmem:[%s322_s3 + $0x20] sm:$0xff] }
   0x8   :  { %65 = vmatpush.msra.mxu1 %v42_v3  ;;  %155 = vmatpush.msra.mxu0 %v38_v12  ;;  %v28_v22 = vld [vmem:[%s322_s3 + $0x18] sm:$0xff]  ;;  %v27_v24 = vld [vmem:[%s322_s3 + $0x10] sm:$0xff]  ;;  %v26_v26 = vld [vmem:[%s322_s3 + $0x8] sm:$0xff] }
   0x9   :  { %188 = vmatmul.msk.f32.vlgmr.msra.gmra.mxu1 %vm46_vm0, %v20_v4  ;;  %145 = vmatpush.msra.mxu3 %v21_v8  ;;  %v25_v27 = vld [vmem:[%s322_s3] sm:$0xff]  ;;  %s197_s3 = smov 32  }
   0xa   :  { %91 = vmatpush.msrb.mxu1 %v24_v5  ;;  %104 = vmatpush.msra.mxu2 %v38_v12  ;;  %v194_v34 = vld [vmem:[%s320_s4] ss:$0 sm:$0xff] }
   0xb   :  { %156 = vmatpush.msra.mxu0 %v37_v13 }
   0xc   :  { %92 = vmatpush.msrb.mxu1 %v23_v6  ;;  %105 = vmatpush.msra.mxu2 %v37_v13 }
   0xd   :  { %157 = vmatpush.msra.mxu0 %v36_v14 }
   0xe   :  { %93 = vmatpush.msrb.mxu1 %v22_v7  ;;  %106 = vmatpush.msra.mxu2 %v36_v14 }
   0xf   :  { %158 = vmatpush.msra.mxu0 %v35_v15 }
  0x10   :  { %94 = vmatpush.msrb.mxu1 %v21_v8  ;;  %107 = vmatpush.msra.mxu2 %v35_v15 }
  0x11   :  { %159 = vmatpush.msra.mxu0 %v34_v16 }
  0x12   :  { %108 = vmatpush.msra.mxu2 %v34_v16 }
  0x13   :  { %160 = vmatpush.msra.mxu0 %v33_v17 }
  0x14   :  { %109 = vmatpush.msra.mxu2 %v33_v17 }
  0x15   :  { %161 = vmatpush.msra.mxu0 %v32_v18 }
  0x16   :  { %110 = vmatpush.msra.mxu2 %v32_v18 }
  0x17   :  { %162 = vmatpush.msra.mxu0 %v31_v19 }
  0x18   :  { %111 = vmatpush.msra.mxu2 %v31_v19 }
  0x19   :  { %163 = vmatpush.msra.mxu0 %v30_v20 }
  0x1a   :  { %112 = vmatpush.msra.mxu2 %v30_v20 }
  0x1b   :  { %164 = vmatpush.msra.mxu0 %v29_v21 }
  0x1c   :  { %113 = vmatpush.msra.mxu2 %v29_v21 }
  0x1d   :  { %165 = vmatpush.msra.mxu0 %v28_v22 }
  0x1e   :  { %114 = vmatpush.msra.mxu2 %v28_v22 }
  0x1f   :  { %166 = vmatpush.msra.mxu0 %v27_v24 }
  0x20   :  { %115 = vmatpush.msra.mxu2 %v27_v24 }
  0x21   :  { %167 = vmatpush.msra.mxu0 %v26_v26 }
  0x22   :  { %116 = vmatpush.msra.mxu2 %v26_v26 }
  0x23   :  { %168 = vmatpush.msra.mxu0 %v25_v27 }
  0x24   :  { %117 = vmatpush.msra.mxu2 %v25_v27 }
  0x86   :  { %v256_v9 = vpop.f32.mrf.mxu1 }
  0x87   :  { %126 = vrot.lane.b32.xlu0 %v256_v9, %s195_s9  ;;  %v73_v35 = vadd.f32 %v194_v34, %v256_v9 }
  0x8f   :  { %75 = vrot.lane.b32.xlu0 %v256_v9, %s196_s10 }
  0xf9   :  { %v127_v23 = vpop.permute.xlu0 %126 }
  0xfa   :  { %190 = vmatmul.msk.f32.vlgmr.msra.gmra.mxu3 %vm46_vm0, %v127_v23 }
 0x101   :  { %v76_v25 = vpop.permute.xlu0 %75 }
 0x102   :  { %189 = vmatmul.msk.f32.vlgmr.msrb.gmra.mxu1 %vm46_vm0, %v76_v25 }
 0x17d   :  { %v147_v28 = vpop.f32.mrf.mxu3 }
 0x17e   :  { %vm150_vm1 = vcmp.gt.f32.partialorder %v147_v28, 0.0  ;;  %v151_v29 = vmul.f32 0.2, %v147_v28 }
 0x17f   :  { %v96_v30 = vpop.f32.mrf.mxu1 }
 0x180   :  { %vm99_vm2 = vcmp.gt.f32.partialorder %v96_v30, 0.0  ;;  %v100_v31 = vmul.f32 0.2, %v96_v30  ;;  %v152_v32 = vsel %vm150_vm1, %v147_v28, %v151_v29 }
 0x181   :  { %169 = vmatmul.f32.vlgmr.msra.gmra.mxu0 %v152_v32 }
 0x182   :  { %v101_v33 = vsel %vm99_vm2, %v96_v30, %v100_v31 }
 0x183   :  { %118 = vmatmul.f32.vlgmr.msra.gmra.mxu2 %v101_v33 }
 0x1fe   :  { %v170_v36 = vpop.f32.mrf.mxu0 }
 0x1ff   :  { %v173_v37 = vadd.f32 %v170_v36, %v73_v35 }
 0x201   :  { %vm174_vm3 = vcmp.gt.f32.partialorder %v173_v37, 0.0  ;;  %v175_v38 = vmul.f32 0.2, %v173_v37 }
 0x203   :  { %v176_v39 = vsel %vm174_vm3, %v173_v37, %v175_v38 }
 0x204   :  { %178 = vrot.lane.b32.xlu1 %v176_v39, %s197_s3 }
 0x206   :  { %v119_v40 = vpop.f32.mrf.mxu2 }
 0x207   :  { %v122_v41 = vadd.f32 %v119_v40, %v73_v35 }
 0x209   :  { %v124_v42 = vmul.f32 0.2, %v122_v41  ;;  %vm123_vm4 = vcmp.gt.f32.partialorder %v122_v41, 0.0 }
 0x20b   :  { %v125_v44 = vsel %vm123_vm4, %v122_v41, %v124_v42 }
 0x276   :  { %v179_v43 = vpop.permute.xlu1 %178 }
 0x277   :  { %v181_v45 = vsel %vm46_vm0, %v125_v44, %v179_v43 }
 0x278   :  { %183 = vst.msk [vmem:[%s323_s5] sm:$0x3] %vm182_vm5, %v181_v45 }

// kernel: tree_gcn_generator.7
= control target key start
LH: loop header
LB: loop body
LE: loop exit
PB: predicated region body
PF: predicated region fallthrough
CT: control target
= control target key end

     0   :  { %vm50_vm0 = vcmask 261120   ;;  %s330_s17 = smov 16   ;;  %s331_s18 = smov 112   ;;  %vm248_vm1 = vcmask 130048   ;;  %vm310_vm6 = vcmask 392192   ;;  %vm312_vm7 = vcmask 523264   ;;  %s479_s1 = inlined_call_operand.vmem [shape: f32[32,144], index: 1, kind: input, shape index: {}]   ;;  %s480_s0 = inlined_call_operand.vmem [shape: f32[8,32], index: 0, kind: input, shape index: {}]   ;;  %s481_s4 = inlined_call_operand.vmem [shape: f32[1,16], index: 4, kind: input, shape index: {}]   ;;  %s482_s2 = inlined_call_operand.vmem [shape: f32[32,128], index: 2, kind: input, shape index: {}]   ;;  %s483_s3 = inlined_call_operand.vmem [shape: f32[128,16], index: 3, kind: input, shape index: {}]   ;;  %s484_s5 = inlined_call_operand.vmem [shape: f32[8,64], index: 5, kind: output, shape index: {}]  }
   0x1   :  { %v48_v0 = vld [vmem:[%s479_s1 + $0x30] sm:$0xff]  ;;  %v49_v1 = vld [vmem:[%s479_s1 + $0x38] sm:$0xff]  ;;  %v46_v2 = vld [vmem:[%s479_s1 + $0x20] sm:$0xff]  ;;  %s333_s19 = smov 80   ;;  %s334_s27 = smov 32  }
   0x2   :  { %66 = vmatpush.msra.mxu0 %v48_v0  ;;  %86 = vmatpush.msra.mxu1 %v49_v1  ;;  %v47_v3 = vld [vmem:[%s479_s1 + $0x28] sm:$0xff]  ;;  %v44_v4 = vld [vmem:[%s479_s1 + $0x10] sm:$0xff]  ;;  %v45_v5 = vld [vmem:[%s479_s1 + $0x18] sm:$0xff] }
   0x3   :  { %v42_v6 = vld [vmem:[%s479_s1] sm:$0xff]  ;;  %v43_v7 = vld [vmem:[%s479_s1 + $0x8] sm:$0xff]  ;;  %v24_v9 = vld [vmem:[%s482_s2 + $0x18] sm:$0xff] }
   0x4   :  { %67 = vmatpush.msra.mxu0 %v46_v2  ;;  %87 = vmatpush.msra.mxu1 %v47_v3  ;;  %v20_v8 = vld [vmem:[%s480_s0] sm:$0xff]  ;;  %v23_v10 = vld [vmem:[%s482_s2 + $0x10] sm:$0xff]  ;;  %v22_v11 = vld [vmem:[%s482_s2 + $0x8] sm:$0xff] }
   0x5   :  { %115 = vmatpush.msra.mxu3 %v24_v9  ;;  %211 = vmatpush.msra.mxu2 %v24_v9  ;;  %v21_v12 = vld [vmem:[%s482_s2] sm:$0xff]  ;;  %s332_s2 = smov 48   ;;  %v40_v16 = vld [vmem:[%s483_s3 + $0x78] sm:$0xff]  ;;  %v39_v17 = vld [vmem:[%s483_s3 + $0x70] sm:$0xff] }
   0x6   :  { %68 = vmatpush.msra.mxu0 %v44_v4  ;;  %88 = vmatpush.msra.mxu1 %v45_v5  ;;  %v38_v18 = vld [vmem:[%s483_s3 + $0x68] sm:$0xff]  ;;  %v37_v19 = vld [vmem:[%s483_s3 + $0x60] sm:$0xff]  ;;  %v36_v20 = vld [vmem:[%s483_s3 + $0x58] sm:$0xff] }
   0x7   :  { %116 = vmatpush.msra.mxu3 %v23_v10  ;;  %212 = vmatpush.msra.mxu2 %v23_v10  ;;  %v35_v21 = vld [vmem:[%s483_s3 + $0x50] sm:$0xff]  ;;  %v34_v22 = vld [vmem:[%s483_s3 + $0x48] sm:$0xff]  ;;  %v33_v23 = vld [vmem:[%s483_s3 + $0x40] sm:$0xff] }
   0x8   :  { %69 = vmatpush.msra.mxu0 %v42_v6  ;;  %89 = vmatpush.msra.mxu1 %v43_v7  ;;  %v32_v24 = vld [vmem:[%s483_s3 + $0x38] sm:$0xff]  ;;  %v31_v25 = vld [vmem:[%s483_s3 + $0x30] sm:$0xff]  ;;  %v30_v26 = vld [vmem:[%s483_s3 + $0x28] sm:$0xff] }
   0x9   :  { %318 = vmatmul.msk.f32.vlgmr.msra.gmra.mxu0 %vm50_vm0, %v20_v8  ;;  %319 = vmatmul.msk.f32.vlgmr.msra.gmra.mxu1 %vm50_vm0, %v20_v8  ;;  %v29_v27 = vld [vmem:[%s483_s3 + $0x20] sm:$0xff]  ;;  %v28_v30 = vld [vmem:[%s483_s3 + $0x18] sm:$0xff]  ;;  %v27_v31 = vld [vmem:[%s483_s3 + $0x10] sm:$0xff] }
   0xa   :  { %163 = vmatpush.msrb.mxu0 %v24_v9  ;;  %117 = vmatpush.msra.mxu3 %v22_v11  ;;  %v26_v35 = vld [vmem:[%s483_s3 + $0x8] sm:$0xff]  ;;  %v25_v36 = vld [vmem:[%s483_s3] sm:$0xff] }
   0xb   :  { %213 = vmatpush.msra.mxu2 %v22_v11  ;;  %174 = vmatpush.msrb.mxu1 %v40_v16  ;;  %v329_v49 = vld [vmem:[%s481_s4] ss:$0 sm:$0xff] }
   0xc   :  { %164 = vmatpush.msrb.mxu0 %v23_v10  ;;  %118 = vmatpush.msra.mxu3 %v21_v12 }
   0xd   :  { %214 = vmatpush.msra.mxu2 %v21_v12  ;;  %175 = vmatpush.msrb.mxu1 %v39_v17 }
   0xe   :  { %165 = vmatpush.msrb.mxu0 %v22_v11  ;;  %126 = vmatpush.msrb.mxu3 %v40_v16 }
   0xf   :  { %264 = vmatpush.msrb.mxu2 %v24_v9  ;;  %176 = vmatpush.msrb.mxu1 %v38_v18 }
  0x10   :  { %166 = vmatpush.msrb.mxu0 %v21_v12  ;;  %127 = vmatpush.msrb.mxu3 %v39_v17 }
  0x11   :  { %265 = vmatpush.msrb.mxu2 %v23_v10  ;;  %177 = vmatpush.msrb.mxu1 %v37_v19 }
  0x12   :  { %222 = vmatpush.msra.mxu0 %v40_v16  ;;  %128 = vmatpush.msrb.mxu3 %v38_v18 }
  0x13   :  { %266 = vmatpush.msrb.mxu2 %v22_v11  ;;  %178 = vmatpush.msrb.mxu1 %v36_v20 }
  0x14   :  { %223 = vmatpush.msra.mxu0 %v39_v17  ;;  %129 = vmatpush.msrb.mxu3 %v37_v19 }
  0x15   :  { %267 = vmatpush.msrb.mxu2 %v21_v12  ;;  %179 = vmatpush.msrb.mxu1 %v35_v21 }
  0x16   :  { %224 = vmatpush.msra.mxu0 %v38_v18  ;;  %130 = vmatpush.msrb.mxu3 %v36_v20 }
  0x17   :  { %180 = vmatpush.msrb.mxu1 %v34_v22 }
  0x18   :  { %225 = vmatpush.msra.mxu0 %v37_v19  ;;  %131 = vmatpush.msrb.mxu3 %v35_v21 }
  0x19   :  { %181 = vmatpush.msrb.mxu1 %v33_v23 }
  0x1a   :  { %226 = vmatpush.msra.mxu0 %v36_v20  ;;  %132 = vmatpush.msrb.mxu3 %v34_v22 }
  0x1b   :  { %182 = vmatpush.msrb.mxu1 %v32_v24 }
  0x1c   :  { %227 = vmatpush.msra.mxu0 %v35_v21  ;;  %133 = vmatpush.msrb.mxu3 %v33_v23 }
  0x1d   :  { %183 = vmatpush.msrb.mxu1 %v31_v25 }
  0x1e   :  { %228 = vmatpush.msra.mxu0 %v34_v22  ;;  %134 = vmatpush.msrb.mxu3 %v32_v24 }
  0x1f   :  { %184 = vmatpush.msrb.mxu1 %v30_v26 }
  0x20   :  { %229 = vmatpush.msra.mxu0 %v33_v23  ;;  %135 = vmatpush.msrb.mxu3 %v31_v25 }
  0x21   :  { %185 = vmatpush.msrb.mxu1 %v29_v27 }
  0x22   :  { %230 = vmatpush.msra.mxu0 %v32_v24  ;;  %136 = vmatpush.msrb.mxu3 %v30_v26 }
  0x23   :  { %186 = vmatpush.msrb.mxu1 %v28_v30 }
  0x24   :  { %231 = vmatpush.msra.mxu0 %v31_v25  ;;  %137 = vmatpush.msrb.mxu3 %v29_v27 }
  0x25   :  { %187 = vmatpush.msrb.mxu1 %v27_v31 }
  0x26   :  { %232 = vmatpush.msra.mxu0 %v30_v26  ;;  %138 = vmatpush.msrb.mxu3 %v28_v30 }
  0x27   :  { %188 = vmatpush.msrb.mxu1 %v26_v35 }
  0x28   :  { %233 = vmatpush.msra.mxu0 %v29_v27  ;;  %139 = vmatpush.msrb.mxu3 %v27_v31 }
  0x29   :  { %189 = vmatpush.msrb.mxu1 %v25_v36 }
  0x2a   :  { %234 = vmatpush.msra.mxu0 %v28_v30  ;;  %140 = vmatpush.msrb.mxu3 %v26_v35 }
  0x2c   :  { %235 = vmatpush.msra.mxu0 %v27_v31  ;;  %141 = vmatpush.msrb.mxu3 %v25_v36 }
  0x2e   :  { %236 = vmatpush.msra.mxu0 %v26_v35 }
  0x30   :  { %237 = vmatpush.msra.mxu0 %v25_v36 }
  0x86   :  { %v406_v13 = vpop.f32.mrf.mxu0  ;;  %v91_v14 = vpop.f32.mrf.mxu1 }
  0x87   :  { %246 = vrot.lane.b32.xlu1 %v91_v14, %s330_s17  ;;  %99 = vrot.lane.b32.xlu2 %v406_v13, %s331_s18  ;;  %v97_v50 = vadd.f32 %v329_v49, %v406_v13 }
  0x88   :  { %195 = vrot.lane.b32.xlu0 %v406_v13, %s332_s2 }
  0x8f   :  { %147 = vrot.lane.b32.xlu1 %v406_v13, %s333_s19 }
  0x90   :  { %244 = vrot.lane.b32.xlu0 %v406_v13, %s330_s17 }
  0xe1   :  { %v100_v15 = vpop.permute.xlu2 %99 }
  0xe2   :  { %320 = vmatmul.msk.f32.vlgmr.msra.gmra.mxu3 %vm50_vm0, %v100_v15 }
  0xf9   :  { %v247_v28 = vpop.permute.xlu1 %246 }
  0xfa   :  { %v196_v29 = vpop.permute.xlu0 %195 }
  0xfb   :  { %322 = vmatmul.msk.f32.vlgmr.msra.gmra.mxu2 %vm50_vm0, %v196_v29 }
  0xfc   :  { %275 = vmatpush.msra.mxu2 %v40_v16 }
  0xfe   :  { %276 = vmatpush.msra.mxu2 %v39_v17 }
 0x100   :  { %277 = vmatpush.msra.mxu2 %v38_v18 }
 0x101   :  { %v148_v32 = vpop.permute.xlu1 %147 }
 0x102   :  { %v245_v33 = vpop.permute.xlu0 %244  ;;  %321 = vmatmul.msk.f32.vlgmr.msrb.gmra.mxu0 %vm50_vm0, %v148_v32  ;;  %278 = vmatpush.msra.mxu2 %v37_v19 }
 0x103   :  { %v249_v34 = vsel %vm248_vm1, %v245_v33, %v247_v28 }
 0x104   :  { %323 = vmatmul.msk.f32.vlgmr.msrb.gmra.mxu2 %vm50_vm0, %v249_v34 }
 0x105   :  { %279 = vmatpush.msra.mxu2 %v36_v20 }
 0x107   :  { %280 = vmatpush.msra.mxu2 %v35_v21 }
 0x109   :  { %281 = vmatpush.msra.mxu2 %v34_v22 }
 0x10b   :  { %282 = vmatpush.msra.mxu2 %v33_v23 }
 0x10d   :  { %283 = vmatpush.msra.mxu2 %v32_v24 }
 0x10f   :  { %284 = vmatpush.msra.mxu2 %v31_v25 }
 0x111   :  { %285 = vmatpush.msra.mxu2 %v30_v26 }
 0x113   :  { %286 = vmatpush.msra.mxu2 %v29_v27 }
 0x115   :  { %287 = vmatpush.msra.mxu2 %v28_v30 }
 0x117   :  { %288 = vmatpush.msra.mxu2 %v27_v31 }
 0x119   :  { %289 = vmatpush.msra.mxu2 %v26_v35 }
 0x11b   :  { %290 = vmatpush.msra.mxu2 %v25_v36 }
 0x165   :  { %v120_v37 = vpop.f32.mrf.mxu3 }
 0x166   :  { %vm123_vm2 = vcmp.gt.f32.partialorder %v120_v37, 0.0  ;;  %v124_v38 = vmul.f32 0.2, %v120_v37 }
 0x168   :  { %v125_v39 = vsel %vm123_vm2, %v120_v37, %v124_v38 }
 0x169   :  { %142 = vmatmul.f32.vlgmr.msrb.gmra.mxu3 %v125_v39 }
 0x17e   :  { %v216_v40 = vpop.f32.mrf.mxu2 }
 0x17f   :  { %vm219_vm3 = vcmp.gt.f32.partialorder %v216_v40, 0.0  ;;  %v220_v41 = vmul.f32 0.2, %v216_v40  ;;  %v168_v42 = vpop.f32.mrf.mxu0 }
 0x180   :  { %vm171_vm4 = vcmp.gt.f32.partialorder %v168_v42, 0.0  ;;  %v172_v43 = vmul.f32 0.2, %v168_v42 }
 0x181   :  { %v221_v44 = vsel %vm219_vm3, %v216_v40, %v220_v41 }
 0x182   :  { %238 = vmatmul.f32.vlgmr.msra.gmra.mxu0 %v221_v44  ;;  %v173_v45 = vsel %vm171_vm4, %v168_v42, %v172_v43 }
 0x183   :  { %190 = vmatmul.f32.vlgmr.msrb.gmra.mxu1 %v173_v45 }
 0x187   :  { %v269_v46 = vpop.f32.mrf.mxu2 }
 0x188   :  { %vm272_vm5 = vcmp.gt.f32.partialorder %v269_v46, 0.0  ;;  %v273_v47 = vmul.f32 0.2, %v269_v46 }
 0x18a   :  { %v274_v48 = vsel %vm272_vm5, %v269_v46, %v273_v47 }
 0x18b   :  { %291 = vmatmul.f32.vlgmr.msra.gmra.mxu2 %v274_v48 }
 0x1ec   :  { %v143_v57 = vpop.f32.mrf.mxu3 }
 0x1ed   :  { %v146_v59 = vadd.f32 %v143_v57, %v97_v50 }
 0x1ff   :  { %v239_v51 = vpop.f32.mrf.mxu0 }
 0x200   :  { %v242_v52 = vadd.f32 %v239_v51, %v97_v50  ;;  %v191_v53 = vpop.f32.mrf.mxu1 }
 0x201   :  { %v194_v54 = vadd.f32 %v191_v53, %v97_v50 }
 0x202   :  { %301 = vrot.lane.b32.xlu0 %v242_v52, %s334_s27 }
 0x203   :  { %297 = vrot.lane.b32.xlu2 %v194_v54, %s330_s17 }
 0x20e   :  { %v292_v55 = vpop.f32.mrf.mxu2 }
 0x20f   :  { %v295_v56 = vadd.f32 %v292_v55, %v97_v50 }
 0x211   :  { %305 = vrot.lane.b32.xlu1 %v295_v56, %s332_s2 }
 0x25d   :  { %v298_v58 = vpop.permute.xlu2 %297 }
 0x25e   :  { %v308_v61 = vsel %vm248_vm1, %v146_v59, %v298_v58 }
 0x274   :  { %v302_v60 = vpop.permute.xlu0 %301 }
 0x275   :  { %v309_v62 = vsel %vm50_vm0, %v308_v61, %v302_v60 }
 0x283   :  { %v306_v63 = vpop.permute.xlu1 %305 }
 0x284   :  { %v311_v0 = vsel %vm310_vm6, %v309_v62, %v306_v63 }
 0x285   :  { %313 = vst.msk [vmem:[%s484_s5] sm:$0xff] %vm312_vm7, %v311_v0 }

</bundles_post_ra>
